<compile_context>
chip_gen: v6e
topology: v6e:2x2x1
jax: 0.10.0
libtpu: 0.0.40
codegen_flags: <defaults>
</compile_context>

<pallas_src>
import jax
import jax.numpy as jnp
from jax.experimental import pallas as pl
from jax.experimental.pallas import tpu as pltpu

# ---- Module constants (FixedPendulum.__init__) ---------------------------
M_ = 0.1
L_ = 2.0
GR = 9.81
I_ = 1.0 / 3.0                      # self.I is overwritten to 1/3 in __init__
COEF = M_ * GR * L_ / (2.0 * I_)    # theta_ddot coefficient = 2.943
INV_I = 1.0 / I_                    # = 3.0

DIM_U = 1
DIM_XC = 1
DIM_UE = DIM_U + DIM_XC             # 2
DIM_X = 2
DIM_XE = DIM_X + DIM_XC             # 3
IN_ROWS = DIM_XE + DIM_UE           # 5 rows: [theta, theta_dot, xc, u0, u1]
OUT_ROWS = 2 * DIM_XE               # 6 rows: [dxdt(3) ; Fx(3)]


def pendulum_kernel(in_ref, out_ref):
    """Lane-dense layout: batch on lanes, features on sublanes.

    in_ref:  (5, TB)   rows = [theta, theta_dot, xc, u0, u1]
    out_ref: (6, TB)   rows 0-2 = dxdt, rows 3-5 = Fx
    """
    slab = in_ref[...]                  # (5, TB)

    theta = slab[0:1, :]                # (1, TB)
    theta_dot = slab[1:2, :]            # (1, TB)
    u0 = slab[3:4, :]                   # (1, TB)
    u1 = slab[4:5, :]                   # (1, TB)

    # jnp.sin lowers to VPU range-reduction + polynomial; negligible vs DMA.
    fx1 = COEF * jnp.sin(theta)
    zeros = jnp.zeros_like(theta)

    # Gx has only two nonzeros ([1,1]=1/I, [2,0]=1), so Gx @ ue collapses to
    # gu = [0, INV_I*u1, u0]; dxdt = Fx + gu.  Single unmasked full-tile store
    # (the sublane shuffles from the concat are hidden under DMA).
    out_ref[...] = jnp.concatenate(
        [theta_dot, fx1 + INV_I * u1, u0,      # dxdt rows
         theta_dot, fx1, zeros],               # Fx rows
        axis=0)


def fixed_pendulum_forward_t(slab, *, batch_tile=65536):
    """Transposed / plumbing-free entry point.

    slab: (5, B) f32, rows = [theta, theta_dot, xc, u0, u1]
    returns (6, B) f32, rows 0-2 = dxdt, rows 3-5 = Fx.
    """
    rows, B = slab.shape
    assert rows == IN_ROWS

    if B > batch_tile:
        tb = batch_tile                 # multiple of 128 -> (8,128) rule holds
        grid = (pl.cdiv(B, tb),)        # last block may overhang: OOB reads are
                                        # column-local garbage, OOB writes dropped
    else:
        tb = B                          # single full-array block (always legal)
        grid = (1,)

    # Per-step VMEM (double-buffered, blocks sublane-padded to 8 rows, f32):
    # ~128 B/lane -> ~8 MiB at tb=65536, under every generation's scoped limit.
    return pl.pallas_call(
        pendulum_kernel,
        grid=grid,
        in_specs=[pl.BlockSpec((IN_ROWS, tb), lambda i: (0, i))],
        out_specs=pl.BlockSpec((OUT_ROWS, tb), lambda i: (0, i)),
        out_shape=jax.ShapeDtypeStruct((OUT_ROWS, B), jnp.float32),
        compiler_params=pltpu.CompilerParams(
            dimension_semantics=("parallel",)),   # v7x: shard batch over 2 TCs
    )(slab)


def _gx_pattern():
    """Batch-independent Gx pattern (3, 2)."""
    return (jnp.zeros((DIM_XE, DIM_UE), jnp.float32)
            .at[1, 1].set(INV_I)
            .at[2, 0].set(1.0))


def fixed_pendulum_forward(xe, ue, *, batch_tile=65536, min_pallas_batch=4096):
    """PyTorch-interface wrapper.

    xe: (B, 3) f32, ue: (B, 2) f32 -> (dxdt (B,3), Fx (B,3), Gx (B,3,2)).
    """
    B = xe.shape[0]
    xe = xe.astype(jnp.float32)
    ue = ue.astype(jnp.float32)

    if B <= min_pallas_batch:
        # Small batch: the pallas_call launch + layout plumbing would dominate;
        # let XLA fuse the trivial math directly (identical algebra).
        theta = xe[:, 0]
        theta_dot = xe[:, 1]
        fx1 = COEF * jnp.sin(theta)
        zeros = jnp.zeros_like(theta)
        Fx = jnp.stack([theta_dot, fx1, zeros], axis=-1)
        dxdt = jnp.stack([theta_dot, fx1 + INV_I * ue[:, 1], ue[:, 0]], axis=-1)
    else:
        # One fused layout pass: (B,5) concat -> transpose -> (5,B) slab.
        slab = jnp.concatenate([xe, ue], axis=1).T          # (5, B)
        out = fixed_pendulum_forward_t(slab, batch_tile=batch_tile)
        # NOTE: these slice+transpose passes exist only to honor the (B,3)
        # interface; feature-major callers should use fixed_pendulum_forward_t.
        dxdt = out[:DIM_XE, :].T                            # (B, 3)
        Fx = out[DIM_XE:, :].T                              # (B, 3)

    # Lazy broadcast of the constant pattern; inside a consumer's jit this is
    # not materialized unless actually needed as a dense (B,3,2) array.
    Gx = jnp.broadcast_to(_gx_pattern(), (B, DIM_XE, DIM_UE))
    return dxdt, Fx, Gx


def _reference(xe, ue):
    """Plain-JAX reference mirroring the PyTorch module."""
    x = xe[..., :DIM_X]
    theta, theta_dot = x[..., 0], x[..., 1]
    fx = jnp.stack([theta_dot, COEF * jnp.sin(theta)], axis=-1)
    B = xe.shape[0]
    gx = jnp.zeros((B, DIM_X, DIM_U)).at[:, 1, 0].set(INV_I)
    Gx = jnp.zeros((B, DIM_XE, DIM_UE))
    Gx = Gx.at[:, :DIM_X, DIM_XC:DIM_U + DIM_XC].set(gx)
    Gx = Gx.at[:, DIM_X:, :DIM_XC].set(jnp.eye(DIM_XC))
    Fx = jnp.concatenate([fx, jnp.zeros((B, DIM_XC))], axis=-1)
    dxdt = Fx + jnp.squeeze(Gx @ ue[..., None], -1)
    return dxdt, Fx, Gx


def _check(B, **kwargs):
    key = jax.random.PRNGKey(0)
    k1, k2 = jax.random.split(key)
    xe = jax.random.normal(k1, (B, DIM_XE), dtype=jnp.float32)
    ue = jax.random.normal(k2, (B, DIM_UE), dtype=jnp.float32)

    dxdt, Fx, Gx = fixed_pendulum_forward(xe, ue, **kwargs)
    jax.block_until_ready((dxdt, Fx, Gx))

    dxdt_r, Fx_r, Gx_r = _reference(xe, ue)
    assert jnp.allclose(dxdt, dxdt_r, atol=1e-5), f"dxdt mismatch (B={B})"
    assert jnp.allclose(Fx, Fx_r, atol=1e-5), f"Fx mismatch (B={B})"
    assert jnp.allclose(Gx, Gx_r, atol=1e-5), f"Gx mismatch (B={B})"


if __name__ == "__main__":
    # Small-batch fast path (no Pallas).
    _check(B=8)
    # Pallas tiled path with an overhanging last block (no jnp.pad): grid=3,
    # last block covers columns 256..383 of a 300-wide array.
    _check(B=300, batch_tile=128, min_pallas_batch=0)
    # Pallas tiled path, grid divides evenly (exercises the "parallel" axis).
    _check(B=512, batch_tile=256, min_pallas_batch=0)
    # Pallas single full-array-block path (tb == B, not a multiple of 128).
    _check(B=200, batch_tile=1024, min_pallas_batch=0)
    print("KERNEL_OK")
</pallas_src>

<mosaic_0001>
module attributes {stable_mosaic.version = 11 : i64} {
  func.func @pendulum_kernel(%arg0: i32, %arg1: memref<5x128xf32, #tpu.memory_space<vmem>>, %arg2: memref<6x128xf32, #tpu.memory_space<vmem>>) attributes {dimension_semantics = [#tpu.dimension_semantics<parallel>], iteration_bounds = array<i64: 3>, scalar_prefetch = 0 : i64, scratch_operands = 0 : i64, tpu.core_type = #tpu.core_type<tc>, window_params = [{transform_indices = @transform_0, window_bounds = array<i64: 5, 128>}, {transform_indices = @transform_1, window_bounds = array<i64: 6, 128>}]} {
    %c0 = arith.constant 0 : index
    %c0_0 = arith.constant 0 : index
    %0 = vector.load %arg1[%c0, %c0_0] : memref<5x128xf32, #tpu.memory_space<vmem>>, vector<5x128xf32>
    %1 = vector.extract_strided_slice %0 {offsets = [0, 0], sizes = [1, 128], strides = [1, 1]} : vector<5x128xf32> to vector<1x128xf32>
    %2 = vector.extract_strided_slice %0 {offsets = [1, 0], sizes = [1, 128], strides = [1, 1]} : vector<5x128xf32> to vector<1x128xf32>
    %3 = vector.extract_strided_slice %0 {offsets = [3, 0], sizes = [1, 128], strides = [1, 1]} : vector<5x128xf32> to vector<1x128xf32>
    %4 = vector.extract_strided_slice %0 {offsets = [4, 0], sizes = [1, 128], strides = [1, 1]} : vector<5x128xf32> to vector<1x128xf32>
    %5 = math.sin %1 : vector<1x128xf32>
    %cst = arith.constant 2.943000e+00 : f32
    %6 = vector.broadcast %cst : f32 to vector<1x128xf32>
    %7 = arith.mulf %6, %5 : vector<1x128xf32>
    %cst_1 = arith.constant 0.000000e+00 : f32
    %8 = vector.broadcast %cst_1 : f32 to vector<1x128xf32>
    %cst_2 = arith.constant 3.000000e+00 : f32
    %9 = vector.broadcast %cst_2 : f32 to vector<1x128xf32>
    %10 = arith.mulf %9, %4 : vector<1x128xf32>
    %11 = arith.addf %7, %10 : vector<1x128xf32>
    %12 = tpu.concatenate %2, %11, %3, %2, %7, %8 in 0 : vector<1x128xf32>, vector<1x128xf32>, vector<1x128xf32>, vector<1x128xf32>, vector<1x128xf32>, vector<1x128xf32> -> vector<6x128xf32>
    %c0_3 = arith.constant 0 : index
    %c0_4 = arith.constant 0 : index
    %13 = vector.load %arg2[%c0_3, %c0_4] : memref<6x128xf32, #tpu.memory_space<vmem>>, vector<6x128xf32>
    tpu.vector_store %arg2[%c0_3, %c0_4], %12 {strides = array<i32>} : memref<6x128xf32, #tpu.memory_space<vmem>>, vector<6x128xf32>,
    return
  }
  func.func @transform_0(%arg0: i32) -> (i32, i32) {
    %c0_i32 = arith.constant 0 : i32
    %c0_i32_0 = arith.constant 0 : i32
    return %c0_i32, %arg0 : i32, i32
  }
  func.func @transform_1(%arg0: i32) -> (i32, i32) {
    %c0_i32 = arith.constant 0 : i32
    %c0_i32_0 = arith.constant 0 : i32
    return %c0_i32, %arg0 : i32, i32
  }
}

</mosaic_0001>

<bundles_post_ra>
// kernel: tpu_custom_call.1
= control target key start
LH: loop header
LB: loop body
LE: loop exit
PB: predicated region body
PF: predicated region fallthrough
CT: control target
= control target key end

     0   :  { %6 = vsyncpa [#allocation3], 0  ;;  %s710_s0 = inlined_call_operand.hbm [shape: f32[5,300], index: 0, kind: input, shape index: {}]   ;;  %s711_s1 = inlined_call_operand.hbm [shape: f32[6,300], index: 1, kind: output, shape index: {}]  }
   0x1   :  { %8 = vsyncpa [#allocation3 + $0x1], 0 }
   0x2   :  { %9 = vsyncpa [#allocation4], 0 }
   0x3   :  { %11 = vsyncpa [#allocation4 + $0x1], 0  ;;  %s537_s6 = smov 0   ;;  %s539_s7 = smov 0  }
   0x4   :  { %s541_s8 = smov 0   ;;  %s543_s9 = smov 0  }
   0x5 LB: > { %s558_s10 = sadd.s32 4294967295, %s517_s9   ;;  %s349_s11 = sadd.s32 4294967294, %s517_s9   ;;  %s517_s9 = sphi %s543_s9, %s727_s9   ;;  %s513_s8 = sphi %s541_s8, %s726_s8   ;;  %s509_s7 = sphi %s539_s7, %s725_s7   ;;  %s505_s6 = sphi %s537_s6, %s724_s6  }
   0x6   : > { %s562_s12 = sadd.s32 1, %s517_s9   ;;  %s24_s13 = sadd.s32 1, %s513_s8 }
   0x7   : > { %s21_s14 = ssub.s32 %s517_s9, %s562_s12  ;;  %p31_p0 = scmp.ne.s32.totalorder %s513_s8, %s509_s7 }
   0x8   : > { %p22_p1 = scmp.eq.s32.totalorder %s21_s14, 0  ;;  %p32_p2 = scmp.eq.s32.totalorder %s517_s9, 0 }
   0x9   : > { %p37_p3 = scmp.ne.s32.totalorder %s509_s7, %s505_s6  ;;  %p38_p4 = scmp.eq.s32.totalorder %s558_s10, 0 }
   0xa   : > { %s574_s15 = scalar_select %p22_p1, %s513_s8, %s24_s13  }
   0xb   : > { %p576_p5 = por %p32_p2, %p31_p0  ;;  %p580_p6 = por %p38_p4, %p37_p3 }
   0xc   : > { %p61_p7 = scmp.eq.s32.totalorder %s558_s10, 2  ;;  %p67_p8 = scmp.eq.s32.totalorder %s349_s11, 2 }
   0xd   : > { %s715_s17 = scalar_select %p580_p6, 1, 0 }
   0xe   : > { %p381_p9 = scmp.lt.s32.totalorder %s517_s9, 3  ;;  %p586_p10 = por %p61_p7, %p31_p0 }
   0xf   : > { %p590_p11 = por %p67_p8, %p37_p3  ;;  %s87_s20 = sand.u32 1, %s513_s8  }
  0x10   : > { %s716_s18 = scalar_select %p586_p10, 1, 0 }
  0x11   : > { %s717_s19 = scalar_select %p590_p11, 1, 0 }
  0x12   : > { %s353_s21 = sshll.u32 %s517_s9, 7  ;;  %s352_s22 = sshll.u32 %s87_s20, 3 }
  0x13   : > { %s599_s25 = scalar_lea.hbm %s710_s0, %s353_s21  ;;  %s91_s26 = scalar_lea.vmem [#allocation2], %s352_s22 }
  0x14   : > { %s98_s27 = sshll.u32 %s91_s26, 4  ;;  %p603_p12 = pnand %p381_p9, %p576_p5  ;;  %s607_s27 = int_to_ptr.vmem [resolvable:$true] %s98_s27 }
  0x15   : > { %s88_s29 = scalar_lea.sflag [#allocation3], %s87_s20  ;;  %s425_s30 = scalar_lea.hbm %s599_s25, 128 }
  0x16   : > { %p426_p1 = scmp.ne.s32.totalorder %s599_s25, %s425_s30  ;;  %p427_p2 = pneg %p603_p12 }
  0x17   : > { %s430_s4 = scalar_lea.hbm %s710_s0, 384  ;;  %p431_p5 = scmp.lt.s32.totalorder %s599_s25, %s710_s0 }
  0x18   : > { %p428_p3 = pnand %p427_p2, %p426_p1  ;;  %p432_p7 = scmp.lt.s32.totalorder %s430_s4, %s425_s30 }
  0x1a   : > { %p429_p4 = pneg %p428_p3  ;;  %p433_p8 = por %p432_p7, %p431_p5 }
  0x1c   : > { %p434_p9 = pnand %p433_p8, %p429_p4 }
  0x1e   : > { %437 = shalt.err (!%p434_p9)
}
  0x1f   : > { %s438_s13 = scalar_lea.vmem %s607_s27, 128  ;;  %s519_s14 = smov [#allocation2]  }
  0x20   : > { %p439_p13 = scmp.ne.s32.totalorder %s607_s27, %s438_s13  ;;  %s443_s16 = sshll.u32 %s519_s14, 4  ;;  %s444_s16 = int_to_ptr.vmem [resolvable:$false] %s443_s16 }
  0x21   : > { %s445_s20 = scalar_lea.vmem %s444_s16, 256  ;;  %p446_p3 = scmp.lt.s32.totalorder %s607_s27, %s444_s16 }
  0x22   : > { %p441_p0 = pnand %p439_p13, %p427_p2  ;;  %p447_p11 = scmp.lt.s32.totalorder %s445_s20, %s438_s13 }
  0x24   : > { %p442_p1 = pneg %p441_p0  ;;  %p448_p10 = por %p447_p11, %p446_p3 }
  0x26   : > { %p449_p6 = pnand %p448_p10, %p442_p1 }
  0x28   : > { %452 = shalt.err (!%p449_p6)
}
  0x29   : > { %376 = dma.hbm_to_vmem [thread:$0]  (!%p603_p12), %s599_s25, 128, %s607_s27, %s88_s29  }
  0x2a   : > { %p719_p4 = scmp.lt.s32.totalorder %s517_s9, 4  ;;  %p720_p5 = scmp.ge.s32.totalorder %s517_s9, 1 }
  0x2c   : > { %p104_p13 = pnand %p720_p5, %p719_p4 }
  0x2d   : > { %s634_s21 = sand.u32 (!%p104_p13), 1, %s509_s7   ;;  %p721_p6 = scmp.ne.s32.totalorder (!%p104_p13), %s715_s17, 0 }
  0x2e   : > { %107 = sbr.rel (%p104_p13) target bundleno = 160 (0xa0), region = 24  ;;  %s355_s22 = sshll.u32 (!%p104_p13), %s634_s21, 3 }
  0x2f   : > { %s110_s23 = scalar_lea.sflag (!%p104_p13), [#allocation3], %s634_s21  ;;  %s113_s24 = scalar_lea.vmem (!%p104_p13), [#allocation2], %s355_s22 }
  0x33   : > { %496 = dma.done.wait (%p721_p6), %s110_s23, 128  }
  0x34   : > { %498 = vsyncadd (%p721_p6), %s110_s23, 4294967168  ;;  %v644_v0 = vld [vmem:[%s113_s24] sm:$0x1f]  ;;  %v520_v12 = vmov 683565275   ;;  %vm254_vm13 = vcmask 1040384  }
  0x35   : > { %v136_v1 = vand.u32 2139095040, %v644_v0  ;;  %v133_v3 = vand.u32 2147483647, %v644_v0  ;;  %v521_v14 = vmov 2475754826   ;;  %vm135_vm7 = vcmp.lt.s32.totalorder %v644_v0, 0 }
  0x36   : > { %v522_v16 = vmov 2131351028   ;;  %v523_v18 = vmov 2102212464   ;;  %v524_v20 = vmov 920167782   ;;  %vm225_vm12 = vweird.f32 %v644_v0 }
  0x37   : > { %v137_v2 = vshrl.u32 %v136_v1, 23  ;;  %v140_v6 = vand.u32 8388607, %v133_v3  ;;  %v525_v27 = vmov 1326507024   ;;  %vm256_vm14 = vcmask 1041408  }
  0x38   : > { %vm134_vm8 = vcmp.le.f32.partialorder %v133_v3, 0.7853982  ;;  %vm258_vm15 = vcmask 1042432   ;;  %s131_s17 = scalar_lea.vmem [#allocation5], %s355_s22  ;;  %s362_s26 = sshll.u32 %s558_s10, 7 }
  0x39   : > { %v357_v4 = vadd.s32 4294967169, %v137_v2  ;;  %v141_v10 = vor.u32 8388608, %v140_v6  ;;  %s279_s25 = sshll.u32 %s131_s17, 4  ;;  %s277_s29 = scalar_lea.hbm %s711_s1, %s362_s26  ;;  %s671_s25 = int_to_ptr.vmem [resolvable:$true] %s279_s25 }
  0x3a   : > { %s266_s30 = scalar_lea.sflag [#allocation4], %s634_s21  ;;  %s453_s2 = scalar_lea.vmem %s671_s25, 128 }
  0x3b   : > { %v143_v5 = vadd.s32 1, %v357_v4  ;;  %v181_v29 = vshll.u32 %v141_v10, 8  ;;  %p454_p10 = scmp.ne.s32.totalorder %s671_s25, %s453_s2  ;;  %p722_p11 = scmp.ne.s32.totalorder %s716_s18, 0 }
  0x3c   : > { %s526_s10 = smov [#allocation5]  }
  0x3d   : > { %vm144_vm0 = vcmp.gt.s32.totalorder %v143_v5, 0  ;;  %p455_p12 = pnand %p454_p10, %p722_p11  ;;  %s457_s3 = sshll.u32 %s526_s10, 4  ;;  %s458_s3 = int_to_ptr.vmem [resolvable:$false] %s457_s3 }
  0x3e   : > { %v145_v7 = vsel %vm144_vm0, %v143_v5, 0  ;;  %vm260_vm0 = vcmask 1043456   ;;  %s459_s4 = scalar_lea.vmem %s458_s3, 256  ;;  %p460_p2 = scmp.lt.s32.totalorder %s671_s25, %s458_s3 }
  0x3f   : > { %v147_v8 = vand.u32 31, %v145_v7  ;;  %v146_v9 = vshrl.u32 %v145_v7, 5  ;;  %p456_p0 = pneg %p455_p12  ;;  %p461_p7 = scmp.lt.s32.totalorder %s459_s4, %s453_s2 }
  0x41   : > { %v148_v11 = vsub.s32 32, %v147_v8  ;;  %v150_v13 = vshll.u32 %v520_v12, %v147_v8  ;;  %v153_v15 = vshll.u32 %v521_v14, %v147_v8  ;;  %v156_v17 = vshll.u32 %v522_v16, %v147_v8  ;;  %p462_p8 = por %p461_p7, %p460_p2 }
  0x42   : > { %v159_v19 = vshll.u32 %v523_v18, %v147_v8  ;;  %v162_v21 = vshll.u32 %v524_v20, %v147_v8  ;;  %vm165_vm1 = vcmp.lt.s32.totalorder %v146_v9, 1  ;;  %vm168_vm2 = vcmp.lt.s32.totalorder %v146_v9, 4 }
  0x43   : > { %v149_v22 = vshrl.u32 %v520_v12, %v148_v11  ;;  %v151_v23 = vshrl.u32 %v521_v14, %v148_v11  ;;  %v154_v24 = vshrl.u32 %v522_v16, %v148_v11  ;;  %v157_v25 = vshrl.u32 %v523_v18, %v148_v11  ;;  %p463_p9 = pnand %p462_p8, %p456_p0 }
  0x44   : > { %v160_v26 = vshrl.u32 %v524_v20, %v148_v11  ;;  %v163_v28 = vshrl.u32 %v525_v27, %v148_v11  ;;  %vm166_vm3 = vcmp.lt.s32.totalorder %v146_v9, 2  ;;  %vm167_vm4 = vcmp.lt.s32.totalorder %v146_v9, 3 }
  0x45   : > { %v152_v30 = vor.u32 %v151_v23, %v150_v13  ;;  %v155_v31 = vor.u32 %v154_v24, %v153_v15  ;;  %v158_v32 = vor.u32 %v157_v25, %v156_v17  ;;  %v238_v25 = vmul.f32 3.0, %v644_v0 }
  0x46   : > { %v161_v33 = vor.u32 %v160_v26, %v159_v19  ;;  %v164_v34 = vor.u32 %v163_v28, %v162_v21 }
  0x47   : > { %v169_v35 = vsel %vm165_vm1, %v149_v22, %v152_v30  ;;  %v170_v36 = vsel %vm168_vm2, %v158_v32, 2102212464  ;;  %v173_v37 = vsel %vm165_vm1, %v152_v30, %v155_v31  ;;  %v177_v38 = vsel %vm165_vm1, %v155_v31, %v158_v32 }
  0x48   : > { %v171_v39 = vsel %vm167_vm4, %v155_v31, %v170_v36  ;;  %v174_v40 = vsel %vm168_vm2, %v161_v33, 920167782  ;;  %v178_v41 = vsel %vm168_vm2, %v164_v34, 1326507024  ;;  %vm262_vm1 = vcmask 1044480  }
  0x49   : > { %v175_v42 = vsel %vm167_vm4, %v158_v32, %v174_v40  ;;  %v179_v43 = vsel %vm167_vm4, %v161_v33, %v178_v41  ;;  %v172_v44 = vsel %vm166_vm3, %v169_v35, %v171_v39  ;;  %v244_v33 = vrot.slane %v644_v0, 1 }
  0x4a   : > { %v176_v45 = vsel %vm166_vm3, %v173_v37, %v175_v42  ;;  %v180_v46 = vsel %vm166_vm3, %v177_v38, %v179_v43  ;;  %v188_v51 = vmul.u32 %v181_v29, %v172_v44  ;;  %v249_v35 = vrot.slane %v644_v0, 6 }
  0x4b   : > { %v650_v47 = vmul.u32.u64.low %v181_v29, %v180_v46  ;;  %v651_v48 = vmul.u32.u64.high %v181_v29, %v180_v46, %v650_v47  ;;  %v653_v49 = vmul.u32.u64.low %v181_v29, %v176_v45  ;;  %v654_v50 = vmul.u32.u64.high %v181_v29, %v176_v45, %v653_v49 }
  0x4c   : > { %v240_v29 = vrot.slane %v238_v25, 4 }
  0x4d   : > { %vm190_vm5 = vc.u32 %v651_v48, %v653_v49  ;;  %v191_v52 = vadd.s32 1, %v654_v50  ;;  %v189_v63 = vadd.s32 %v653_v49, %v651_v48 }
  0x4f   : > { %v192_v53 = vsel %vm190_vm5, %v191_v52, %v654_v50 }
  0x50   : > { %v193_v54 = vadd.s32 %v192_v53, %v188_v51 }
  0x52   : > { %v194_v55 = vadd.s32 536870912, %v193_v54 }
  0x54   : > { %v195_v56 = vshrl.u32 %v194_v55, 30 }
  0x56   : > { %v196_v57 = vshll.u32 %v195_v56, 30  ;;  %v219_v14 = vsub.s32 4, %v195_v56 }
  0x58   : > { %v197_v58 = vsub.s32 %v193_v54, %v196_v57  ;;  %v220_v17 = vsel %vm135_vm7, %v219_v14, %v195_v56 }
  0x59   : > { %v222_v19 = vsel %vm134_vm8, 0, %v220_v17 }
  0x5a   : > { %v199_v59 = vsub.s32 0, %v197_v58  ;;  %v226_v20 = vadd.s32 3, %v222_v19 }
  0x5c   : > { %v358_v60 = vmin.u32 %v199_v59, %v197_v58  ;;  %v227_v21 = vand.u32 3, %v226_v20 }
  0x5e   : > { %v201_v61 = vclz %v358_v60  ;;  %vm232_vm9 = vcmp.eq.s32.totalorder %v227_v21, 2  ;;  %vm229_vm10 = vcmp.eq.s32.totalorder %v227_v21, 0  ;;  %vm228_vm11 = vcmp.lt.s32.totalorder %v227_v21, 2 }
  0x60   : > { %v359_v62 = vadd.s32 4294967294, %v201_v61 }
  0x62   : > { %vm360_vm6 = vcmp.lt.s32.totalorder %v359_v62, 0 }
  0x63   : > { %v204_v1 = vsel %vm360_vm6, 0, %v359_v62 }
  0x64   : > { %v205_v2 = vsub.s32 32, %v204_v1  ;;  %v206_v4 = vshll.u32 %v197_v58, %v204_v1  ;;  %v209_v5 = vsub.s32 4294967266, %v204_v1 }
  0x66   : > { %v207_v6 = vshrl.u32 %v189_v63, %v205_v2  ;;  %v210_v7 = vadd.s32 127, %v209_v5 }
  0x68   : > { %v208_v8 = vor.u32 %v207_v6, %v206_v4  ;;  %v211_v9 = vshll.u32 %v210_v7, 23 }
  0x6a   : > { %v212_v10 = vor.u32 4788187, %v211_v9  ;;  %v215_v11 = vcvt.s32.f32 %v208_v8 }
  0x6c   : > { %v213_v12 = vand.u32 2147483647, %v212_v10 }
  0x6e   : > { %v216_v13 = vmul.f32 %v215_v11, %v213_v12 }
  0x70   : > { %v217_v15 = vxor.u32 2147483648, %v216_v13 }
  0x72   : > { %v218_v16 = vsel %vm135_vm7, %v217_v15, %v216_v13 }
  0x73   : > { %v221_v18 = vsel %vm134_vm8, %v644_v0, %v218_v16 }
  0x74   : > { %421 = vcosq.f32 %v221_v18 }
  0x75   : > { %423 = vsinq.f32 %v221_v18 }
  0x81   : > { %v422_v22 = vpop.eup %421 }
  0x82   : > { %v424_v23 = vpop.eup %423  ;;  %v233_v24 = vxor.u32 2147483648, %v422_v22 }
  0x83   : > { %v230_v26 = vxor.u32 2147483648, %v424_v23 }
  0x84   : > { %v234_v3 = vsel %vm232_vm9, %v233_v24, %v424_v23 }
  0x85   : > { %v231_v27 = vsel %vm229_vm10, %v422_v22, %v230_v26 }
  0x86   : > { %v235_v28 = vsel %vm228_vm11, %v231_v27, %v234_v3 }
  0x87   : > { %v236_v30 = vsel %vm225_vm12, nan, %v235_v28 }
  0x88   : > { %v237_v31 = vmul.f32 2.943, %v236_v30 }
  0x8a   : > { %v242_v32 = vadd.f32 %v240_v29, %v237_v31  ;;  %v252_v36 = vrot.slane %v237_v31, 4 }
  0x8c   : > { %v247_v34 = vrot.slane %v242_v32, 7 }
  0x8e   : > { %v255_v37 = vsel %vm254_vm13, %v244_v33, %v247_v34 }
  0x8f   : > { %v257_v38 = vsel %vm256_vm14, %v255_v37, %v244_v33 }
  0x90   : > { %v259_v39 = vsel %vm258_vm15, %v257_v38, %v249_v35 }
  0x91   : > { %v261_v0 = vsel %vm260_vm0, %v259_v39, %v252_v36 }
  0x92   : > { %v263_v40 = vsel %vm262_vm1, %v261_v0, 0.0 }
  0x93   : > { %264 = vst [vmem:[%s131_s17] sm:$0x3f] %v263_v40 }
  0x94   : > { %466 = shalt.err (!%p463_p9)
}
  0x95   : > { %s467_s5 = scalar_lea.hbm %s277_s29, 128  ;;  %s471_s14 = scalar_lea.hbm %s711_s1, 384 }
  0x96   : > { %p468_p1 = scmp.ne.s32.totalorder %s277_s29, %s467_s5  ;;  %p472_p5 = scmp.lt.s32.totalorder %s277_s29, %s711_s1 }
  0x97   : > { %p473_p13 = scmp.lt.s32.totalorder %s471_s14, %s467_s5 }
  0x98   : > { %p469_p3 = pnand %p468_p1, %p722_p11 }
  0x99   : > { %p474_p6 = por %p473_p13, %p472_p5 }
  0x9a   : > { %p470_p4 = pneg %p469_p3 }
  0x9c   : > { %p475_p10 = pnand %p474_p6, %p470_p4 }
  0x9e   : > { %478 = shalt.err (!%p475_p10)
}
  0x9f   : > { %371 = dma.vmem_to_hbm [thread:$0]  (%p722_p11), %s671_s25, 128, %s277_s29, %s266_s30  }
  0xa0 PF: > { %p382_p12 = scmp.ge.s32.totalorder %s517_s9, 2  ;;  %s291_s21 = sand.u32 1, %s505_s6  }
  0xa1   : > { %p723_p0 = scmp.ne.s32.totalorder %s717_s19, 0  ;;  %s292_s22 = scalar_lea.sflag [#allocation4], %s291_s21 }
  0xa3   : > { %p378_p2 = pnand %p382_p12, %p723_p0 }
  0xa5   : > { %p379_p7 = pneg %p378_p2 }
  0xa7   : > { %500 = dma.done.wait (%p379_p7), %s292_s22, 128  }
  0xa8   : > { %502 = vsyncadd (%p379_p7), %s292_s22, 4294967168  ;;  %p14_p8 = scmp.ge.s32.totalorder %s562_s12, 5   ;;  %s724_s6 = smov %s509_s7 }
  0xa9   : > { %s725_s7 = smov %s513_s8  ;;  %s726_s8 = smov %s574_s15 }
  0xaa   : > { %s727_s9 = smov %s562_s12  ;;  %16 = sbr.rel (!%p14_p8) target bundleno = 5 (0x5), region = 69 }
  0xaf   :  { %297 = vsyncpa [#allocation3], 1 }
  0xb0   :  { %299 = vsyncpa [#allocation3 + $0x1], 1 }
  0xb1   :  { %300 = vsyncpa [#allocation4], 1 }
  0xb2   :  { %302 = vsyncpa [#allocation4 + $0x1], 1 }

</bundles_post_ra>
